<compile_context>
chip_gen: v5e
topology: v5e:2x2
jax: 0.10.0
libtpu: 0.0.40
codegen_flags: <defaults>
</compile_context>

<pallas_src>
import functools
import math

import jax
import jax.numpy as jnp
from jax.experimental import pallas as pl
from jax.experimental.pallas import tpu as pltpu


def _tversky_sums_kernel(tgt_ref, logit_ref, out_ref, *,
                         hw, num_classes, s_tile, fold_rows,
                         tiles_per_split, masked_tail):
    """Accumulate per-class [tp, p_sum] lane-partials into out_ref.

    out_ref block: (2*C, fold_rows, 128) f32, resident across the j axis for a
    given (n, split).  Rows [0, C) hold sum(p * onehot) partials, rows [C, 2C)
    hold sum(p) partials; all cross-lane / cross-sublane reduction is deferred
    to the wrapper (lane-dense stores, no XLU in the kernel).
    """
    split = pl.program_id(1)
    j = pl.program_id(2)

    @pl.when(j == 0)
    def _init():
        out_ref[...] = jnp.zeros_like(out_ref)

    C = num_classes
    x = logit_ref[...].astype(jnp.float32)            # (C, s_tile, 128)

    # Softmax over the class axis.  C is the leading (non-vreg) dim, so the
    # max / sum across classes are plain per-slab VPU ops; one EUP reciprocal
    # per column replaces C divides.
    m = x[0]
    for c in range(1, C):
        m = jnp.maximum(m, x[c])
    e = [jnp.exp(x[c] - m) for c in range(C)]
    den = e[0]
    for c in range(1, C):
        den = den + e[c]
    inv = pl.reciprocal(den)                          # (s_tile, 128)

    tgt = tgt_ref[...]                                # (s_tile, 128) int32

    def _fold(v):
        # (s_tile, 128) -> (fold_rows, 128); pure VPU vreg adds, no XLU.
        if s_tile == fold_rows:
            return v
        return jnp.sum(v.reshape(s_tile // fold_rows, fold_rows, 128), axis=0)

    def _accumulate(valid):
        for c in range(C):
            p_c = e[c] * inv                          # softmax prob, class c
            if valid is not None:
                # Zero padded / OOB-block columns (also squashes any NaN the
                # softmax produced on garbage block padding).
                p_c = jnp.where(valid, p_c, 0.0)
            tp_c = jnp.where(tgt == c, p_c, 0.0)      # select, no convert+mul
            out_ref[c] += _fold(tp_c)                 # sum(p * t) partials
            out_ref[C + c] += _fold(p_c)              # sum(p)     partials

    if masked_tail:
        tile_cols = s_tile * 128
        tile_start = (split * tiles_per_split + j) * tile_cols
        straddles = tile_start + tile_cols > hw       # only the last global tile

        @pl.when(straddles)
        def _tail():
            col = (jax.lax.broadcasted_iota(jnp.int32, (s_tile, 128), 0) * 128
                   + jax.lax.broadcasted_iota(jnp.int32, (s_tile, 128), 1)
                   + tile_start)
            _accumulate(col < hw)

        @pl.when(jnp.logical_not(straddles))
        def _full():
            _accumulate(None)
    else:
        _accumulate(None)


def _choose_tiling(S, C, itemsize, tile_rows):
    """Pick (s_tile, n_tiles, n_splits, tiles_per_split, fold_rows, limit_cap)."""
    try:
        info = pltpu.get_tpu_info()
        vmem_cap = int(getattr(info, "vmem_capacity_bytes", 128 << 20))
    except Exception:                                  # non-TPU tracing / interpret
        vmem_cap = 128 << 20
    small_vmem = vmem_cap <= (64 << 20)                # v7x-class parts
    budget = (12 << 20) if small_vmem else (28 << 20)  # double-buffered inputs
    limit_cap = (40 << 20) if small_vmem else (64 << 20)

    # Bytes per 128-column row: double-buffered inputs + ~3 f32 temporaries.
    row_bytes = 2 * (C * 128 * itemsize + 128 * 4) + 3 * (C * 128 * 4)
    max_rows = max(8, (budget // row_bytes) // 8 * 8)

    if tile_rows is not None:
        req = int(tile_rows)
        s_tile = S if req >= S else min(max(8, (req // 8) * 8), max_rows)
    else:
        s_tile = S if S <= max_rows else max_rows
    n_tiles = -(-S // s_tile)

    # Prefer an even tile count so the HW-tile axis can be split across the
    # two v7x TensorCores (harmless on single-core v5e/v6e).
    if tile_rows is None and S >= 16 and n_tiles % 2 == 1:
        half = -(-S // (n_tiles + 1))
        cand = min(max_rows, -(-half // 8) * 8)
        if cand >= 8:
            n2 = -(-S // cand)
            if n2 % 2 == 0:
                s_tile, n_tiles = cand, n2

    n_splits = 2 if (n_tiles >= 2 and n_tiles % 2 == 0) else 1
    tiles_per_split = n_tiles // n_splits
    fold_rows = 8 if s_tile % 8 == 0 else s_tile
    return s_tile, n_tiles, n_splits, tiles_per_split, fold_rows, limit_cap


def tversky_focal_loss(predict, target, weight=None, ignore_index=-100,
                       smooth=1.0, alpha=0.7, gamma=1.33, tile_rows=None,
                       logits_compute_dtype=None):
    """predict: (N, C, *spatial) float logits; target: (N, *spatial) int ids.

    logits_compute_dtype: optionally cast logits at the pallas_call boundary
    (e.g. jnp.bfloat16 on bandwidth-bound v5e); the kernel still does the
    softmax in float32.
    """
    # TODO(synk): the PyTorch module also accepts `target` already shaped like
    # `predict` (soft / pre-one-hot labels); only the integer class-map path is
    # implemented here.
    assert predict.shape[0] == target.shape[0], "predict & target batch size do not match"
    N, C = predict.shape[0], predict.shape[1]
    HW = math.prod(predict.shape[2:]) if len(predict.shape) > 2 else 1

    logits = predict.reshape(N, C, HW)                 # free reshape of NCHW
    if logits_compute_dtype is not None:
        logits = logits.astype(logits_compute_dtype)
    tgt = target.reshape(N, HW).astype(jnp.int32)

    HW_pad = -(-HW // 128) * 128
    if HW_pad != HW:
        # Pad so the lane-dense (N, C, S, 128) view exists; padded logits are
        # 0 (finite softmax) and padded labels are C (one-hot false); the
        # kernel's tail mask zeroes their contribution anyway.
        logits = jnp.pad(logits, ((0, 0), (0, 0), (0, HW_pad - HW)))
        tgt = jnp.pad(tgt, ((0, 0), (0, HW_pad - HW)), constant_values=C)
    S = HW_pad // 128
    logits = logits.reshape(N, C, S, 128)
    tgt = tgt.reshape(N, S, 128)

    itemsize = jnp.dtype(logits.dtype).itemsize
    (s_tile, n_tiles, n_splits, tiles_per_split, fold_rows,
     limit_cap) = _choose_tiling(S, C, itemsize, tile_rows)
    masked_tail = n_tiles * s_tile * 128 > HW

    in_bytes = 2 * (C * s_tile * 128 * itemsize + s_tile * 128 * 4)
    tmp_bytes = 3 * C * s_tile * 128 * 4
    out_bytes = 2 * (2 * C * fold_rows * 128 * 4)
    vmem_limit = int(min(limit_cap,
                         max(32 << 20, in_bytes + tmp_bytes + out_bytes + (8 << 20))))

    kernel = functools.partial(
        _tversky_sums_kernel, hw=HW, num_classes=C, s_tile=s_tile,
        fold_rows=fold_rows, tiles_per_split=tiles_per_split,
        masked_tail=masked_tail)

    part = pl.pallas_call(
        kernel,
        out_shape=jax.ShapeDtypeStruct((N, n_splits, 2 * C, fold_rows, 128),
                                       jnp.float32),
        grid_spec=pltpu.PrefetchScalarGridSpec(
            num_scalar_prefetch=0,
            grid=(N, n_splits, tiles_per_split),
            in_specs=[
                pl.BlockSpec((None, s_tile, 128),
                             lambda n, s, j: (n, s * tiles_per_split + j, 0)),
                pl.BlockSpec((None, C, s_tile, 128),
                             lambda n, s, j: (n, 0, s * tiles_per_split + j, 0)),
            ],
            out_specs=pl.BlockSpec((None, None, 2 * C, fold_rows, 128),
                                   lambda n, s, j: (n, s, 0, 0, 0)),
        ),
        compiler_params=pltpu.CompilerParams(
            dimension_semantics=("parallel", "parallel", "arbitrary"),
            vmem_limit_bytes=vmem_limit),
    )(tgt, logits)

    # Deferred reductions over (n, split) partials, sublane rows and lanes.
    sums = jnp.sum(part.reshape(N * n_splits, 2 * C, fold_rows * 128),
                   axis=(0, 2))                        # (2C,)
    tp, p_sum = sums[:C], sums[C:]

    # Per-class pixel counts straight from the (C-times smaller) label map;
    # out-of-range ids are dropped (matches the one-hot reference).
    t_flat = target.reshape(-1).astype(jnp.int32)
    t_counts = jnp.zeros((C,), jnp.float32).at[t_flat].add(1.0, mode="drop")

    fn = t_counts - tp                                 # sum((1 - p) * t)
    fp = p_sum - tp                                    # sum(p * (1 - t))

    beta = 1.0 - alpha
    num = tp + smooth
    den = tp + alpha * fn + beta * fp + smooth
    per_class = jnp.power(1.0 - num / den, 1.0 / gamma)

    if weight is None:
        w = jnp.full((C,), 1.0 / C, dtype=jnp.float32)
    else:
        w = jnp.asarray(weight, dtype=jnp.float32)
        assert w.shape[0] == C, f"Expect weight shape [{C}], got {w.shape}"
    keep = jnp.arange(C) != ignore_index
    return jnp.sum(jnp.where(keep, per_class * w, 0.0))


def _reference_loss(predict, target, weight=None, ignore_index=-100,
                    smooth=1.0, alpha=0.7, gamma=1.33):
    """Plain-JAX reference matching the PyTorch module."""
    C = predict.shape[1]
    p = jax.nn.softmax(predict.astype(jnp.float32), axis=1)
    t = jax.nn.one_hot(target, C, dtype=jnp.float32)
    t = jnp.moveaxis(t, -1, 1)                         # (N, C, *spatial)
    beta = 1.0 - alpha
    if weight is None:
        weight = jnp.full((C,), 1.0 / C, dtype=jnp.float32)
    else:
        weight = jnp.asarray(weight, dtype=jnp.float32)
    total = jnp.float32(0.0)
    for i in range(C):
        if i == ignore_index:
            continue
        pi = p[:, i].reshape(-1)
        ti = t[:, i].reshape(-1)
        num = jnp.sum(pi * ti) + smooth
        den = (jnp.sum(pi * ti) + alpha * jnp.sum((1 - pi) * ti)
               + beta * jnp.sum(pi * (1 - ti)) + smooth)
        total = total + weight[i] * jnp.power(1 - num / den, 1.0 / gamma)
    return total


if __name__ == "__main__":
    key = jax.random.PRNGKey(0)
    keys = jax.random.split(key, 8)

    def _check(name, loss, ref):
        assert jnp.allclose(loss, ref, atol=3e-5, rtol=3e-5), \
            (name, float(loss), float(ref))

    # Case A: small even shapes, single full-extent tile, no padding/masking.
    N, C = 2, 4
    predict = jax.random.normal(keys[0], (N, C, 16, 16), dtype=jnp.float32)
    target = jax.random.randint(keys[1], (N, 16, 16), 0, C, dtype=jnp.int32)
    loss = jax.block_until_ready(tversky_focal_loss(predict, target))
    _check("A", loss, _reference_loss(predict, target))

    # Case B: ragged HW (400 -> padded to 512), class weights + ignore_index.
    predict = jax.random.normal(keys[2], (N, C, 20, 20), dtype=jnp.float32)
    target = jax.random.randint(keys[3], (N, 20, 20), 0, C, dtype=jnp.int32)
    wvec = jnp.array([0.1, 0.2, 0.3, 0.4], dtype=jnp.float32)
    loss = jax.block_until_ready(
        tversky_focal_loss(predict, target, weight=wvec, ignore_index=1))
    _check("B", loss, _reference_loss(predict, target, weight=wvec, ignore_index=1))

    # Case C: N=1, S=18 -> auto-split into two 16-row tiles (dual-core split
    # path) with a masked / OOB-block tail.
    predict = jax.random.normal(keys[4], (1, C, 48, 48), dtype=jnp.float32)
    target = jax.random.randint(keys[5], (1, 48, 48), 0, C, dtype=jnp.int32)
    loss = jax.block_until_ready(tversky_focal_loss(predict, target))
    _check("C", loss, _reference_loss(predict, target))

    # Case D: forced small tiles -> multi-step accumulation per split, C=5.
    C2 = 5
    predict = jax.random.normal(keys[6], (2, C2, 64, 64), dtype=jnp.float32)
    target = jax.random.randint(keys[7], (2, 64, 64), 0, C2, dtype=jnp.int32)
    wvec2 = jnp.array([0.1, 0.15, 0.2, 0.25, 0.3], dtype=jnp.float32)
    loss = jax.block_until_ready(
        tversky_focal_loss(predict, target, weight=wvec2, tile_rows=8))
    _check("D", loss, _reference_loss(predict, target, weight=wvec2))

    print("KERNEL_OK")
</pallas_src>

<mosaic_0001>
module attributes {stable_mosaic.version = 11 : i64} {
  func.func @_tversky_sums_kernel(%arg0: i32, %arg1: i32, %arg2: i32, %arg3: memref<1x2x128xi32, #tpu.memory_space<vmem>>, %arg4: memref<1x4x2x128xf32, #tpu.memory_space<vmem>>, %arg5: memref<1x1x8x2x128xf32, #tpu.memory_space<vmem>>) attributes {dimension_semantics = [#tpu.dimension_semantics<parallel>, #tpu.dimension_semantics<parallel>, #tpu.dimension_semantics<arbitrary>], iteration_bounds = array<i64: 2, 1, 1>, scalar_prefetch = 0 : i64, scratch_operands = 0 : i64, tpu.core_type = #tpu.core_type<tc>, window_params = [{transform_indices = @transform_0, window_bounds = array<i64: 1, 2, 128>}, {transform_indices = @transform_1, window_bounds = array<i64: 1, 4, 2, 128>}, {transform_indices = @transform_2, window_bounds = array<i64: 1, 1, 8, 2, 128>}]} {
    %c0_i32 = arith.constant 0 : i32
    %0 = arith.cmpi eq, %arg2, %c0_i32 : i32
    %1 = arith.extui %0 : i1 to i32
    %c0_i32_0 = arith.constant 0 : i32
    %2 = arith.cmpi ne, %1, %c0_i32_0 : i32
    scf.if %2 {
      %cst_84 = arith.constant 0.000000e+00 : f32
      %106 = vector.broadcast %cst_84 : f32 to vector<8x2x128xf32>
      %c0_85 = arith.constant 0 : index
      %c0_86 = arith.constant 0 : index
      %c0_87 = arith.constant 0 : index
      %c0_88 = arith.constant 0 : index
      %c0_89 = arith.constant 0 : index
      %107 = vector.load %arg5[%c0_85, %c0_86, %c0_87, %c0_88, %c0_89] : memref<1x1x8x2x128xf32, #tpu.memory_space<vmem>>, vector<1x1x8x2x128xf32>
      %108 = vector.shape_cast %107 : vector<1x1x8x2x128xf32> to vector<8x2x128xf32>
      %109 = vector.shape_cast %106 : vector<8x2x128xf32> to vector<1x1x8x2x128xf32>
      tpu.vector_store %arg5[%c0_85, %c0_86, %c0_87, %c0_88, %c0_89], %109 {strides = array<i32>} : memref<1x1x8x2x128xf32, #tpu.memory_space<vmem>>, vector<1x1x8x2x128xf32>,
    } else {
    }
    %c0 = arith.constant 0 : index
    %c0_1 = arith.constant 0 : index
    %c0_2 = arith.constant 0 : index
    %c0_3 = arith.constant 0 : index
    %3 = vector.load %arg4[%c0, %c0_1, %c0_2, %c0_3] : memref<1x4x2x128xf32, #tpu.memory_space<vmem>>, vector<1x4x2x128xf32>
    %4 = vector.shape_cast %3 : vector<1x4x2x128xf32> to vector<4x2x128xf32>
    %5 = vector.extract_strided_slice %4 {offsets = [0, 0, 0], sizes = [1, 2, 128], strides = [1, 1, 1]} : vector<4x2x128xf32> to vector<1x2x128xf32>
    %6 = vector.shape_cast %5 : vector<1x2x128xf32> to vector<2x128xf32>
    %7 = vector.extract_strided_slice %4 {offsets = [1, 0, 0], sizes = [1, 2, 128], strides = [1, 1, 1]} : vector<4x2x128xf32> to vector<1x2x128xf32>
    %8 = vector.shape_cast %7 : vector<1x2x128xf32> to vector<2x128xf32>
    %9 = arith.maximumf %6, %8 : vector<2x128xf32>
    %10 = vector.extract_strided_slice %4 {offsets = [2, 0, 0], sizes = [1, 2, 128], strides = [1, 1, 1]} : vector<4x2x128xf32> to vector<1x2x128xf32>
    %11 = vector.shape_cast %10 : vector<1x2x128xf32> to vector<2x128xf32>
    %12 = arith.maximumf %9, %11 : vector<2x128xf32>
    %13 = vector.extract_strided_slice %4 {offsets = [3, 0, 0], sizes = [1, 2, 128], strides = [1, 1, 1]} : vector<4x2x128xf32> to vector<1x2x128xf32>
    %14 = vector.shape_cast %13 : vector<1x2x128xf32> to vector<2x128xf32>
    %15 = arith.maximumf %12, %14 : vector<2x128xf32>
    %16 = vector.extract_strided_slice %4 {offsets = [0, 0, 0], sizes = [1, 2, 128], strides = [1, 1, 1]} : vector<4x2x128xf32> to vector<1x2x128xf32>
    %17 = vector.shape_cast %16 : vector<1x2x128xf32> to vector<2x128xf32>
    %18 = arith.subf %17, %15 : vector<2x128xf32>
    %19 = math.exp %18 : vector<2x128xf32>
    %20 = vector.extract_strided_slice %4 {offsets = [1, 0, 0], sizes = [1, 2, 128], strides = [1, 1, 1]} : vector<4x2x128xf32> to vector<1x2x128xf32>
    %21 = vector.shape_cast %20 : vector<1x2x128xf32> to vector<2x128xf32>
    %22 = arith.subf %21, %15 : vector<2x128xf32>
    %23 = math.exp %22 : vector<2x128xf32>
    %24 = vector.extract_strided_slice %4 {offsets = [2, 0, 0], sizes = [1, 2, 128], strides = [1, 1, 1]} : vector<4x2x128xf32> to vector<1x2x128xf32>
    %25 = vector.shape_cast %24 : vector<1x2x128xf32> to vector<2x128xf32>
    %26 = arith.subf %25, %15 : vector<2x128xf32>
    %27 = math.exp %26 : vector<2x128xf32>
    %28 = vector.extract_strided_slice %4 {offsets = [3, 0, 0], sizes = [1, 2, 128], strides = [1, 1, 1]} : vector<4x2x128xf32> to vector<1x2x128xf32>
    %29 = vector.shape_cast %28 : vector<1x2x128xf32> to vector<2x128xf32>
    %30 = arith.subf %29, %15 : vector<2x128xf32>
    %31 = math.exp %30 : vector<2x128xf32>
    %32 = arith.addf %19, %23 : vector<2x128xf32>
    %33 = arith.addf %32, %27 : vector<2x128xf32>
    %34 = arith.addf %33, %31 : vector<2x128xf32>
    %35 = tpu.reciprocal %34 : vector<2x128xf32> -> vector<2x128xf32>
    %c0_4 = arith.constant 0 : index
    %c0_5 = arith.constant 0 : index
    %c0_6 = arith.constant 0 : index
    %36 = vector.load %arg3[%c0_4, %c0_5, %c0_6] : memref<1x2x128xi32, #tpu.memory_space<vmem>>, vector<1x2x128xi32>
    %37 = vector.shape_cast %36 : vector<1x2x128xi32> to vector<2x128xi32>
    %38 = arith.mulf %19, %35 : vector<2x128xf32>
    %c0_i32_7 = arith.constant 0 : i32
    %39 = vector.broadcast %c0_i32_7 : i32 to vector<2x128xi32>
    %40 = arith.cmpi eq, %37, %39 : vector<2x128xi32>
    %cst = arith.constant 0.000000e+00 : f32
    %41 = vector.broadcast %cst : f32 to vector<2x128xf32>
    %42 = arith.select %40, %38, %41 : vector<2x128xi1>, vector<2x128xf32>
    %c0_8 = arith.constant 0 : index
    %c0_9 = arith.constant 0 : index
    %c0_10 = arith.constant 0 : index
    %c0_11 = arith.constant 0 : index
    %c0_12 = arith.constant 0 : index
    %43 = vector.load %arg5[%c0_8, %c0_9, %c0_10, %c0_11, %c0_12] : memref<1x1x8x2x128xf32, #tpu.memory_space<vmem>>, vector<1x1x1x2x128xf32>
    %44 = vector.shape_cast %43 : vector<1x1x1x2x128xf32> to vector<2x128xf32>
    %45 = arith.addf %44, %42 : vector<2x128xf32>
    %c0_13 = arith.constant 0 : index
    %c0_14 = arith.constant 0 : index
    %c0_15 = arith.constant 0 : index
    %c0_16 = arith.constant 0 : index
    %c0_17 = arith.constant 0 : index
    %46 = vector.load %arg5[%c0_13, %c0_14, %c0_15, %c0_16, %c0_17] : memref<1x1x8x2x128xf32, #tpu.memory_space<vmem>>, vector<1x1x1x2x128xf32>
    %47 = vector.shape_cast %46 : vector<1x1x1x2x128xf32> to vector<2x128xf32>
    %48 = vector.shape_cast %45 : vector<2x128xf32> to vector<1x1x1x2x128xf32>
    tpu.vector_store %arg5[%c0_13, %c0_14, %c0_15, %c0_16, %c0_17], %48 {strides = array<i32>} : memref<1x1x8x2x128xf32, #tpu.memory_space<vmem>>, vector<1x1x1x2x128xf32>,
    %c0_18 = arith.constant 0 : index
    %c0_19 = arith.constant 0 : index
    %c4 = arith.constant 4 : index
    %c0_20 = arith.constant 0 : index
    %c0_21 = arith.constant 0 : index
    %49 = vector.load %arg5[%c0_18, %c0_19, %c4, %c0_20, %c0_21] : memref<1x1x8x2x128xf32, #tpu.memory_space<vmem>>, vector<1x1x1x2x128xf32>
    %50 = vector.shape_cast %49 : vector<1x1x1x2x128xf32> to vector<2x128xf32>
    %51 = arith.addf %50, %38 : vector<2x128xf32>
    %c0_22 = arith.constant 0 : index
    %c0_23 = arith.constant 0 : index
    %c4_24 = arith.constant 4 : index
    %c0_25 = arith.constant 0 : index
    %c0_26 = arith.constant 0 : index
    %52 = vector.load %arg5[%c0_22, %c0_23, %c4_24, %c0_25, %c0_26] : memref<1x1x8x2x128xf32, #tpu.memory_space<vmem>>, vector<1x1x1x2x128xf32>
    %53 = vector.shape_cast %52 : vector<1x1x1x2x128xf32> to vector<2x128xf32>
    %54 = vector.shape_cast %51 : vector<2x128xf32> to vector<1x1x1x2x128xf32>
    tpu.vector_store %arg5[%c0_22, %c0_23, %c4_24, %c0_25, %c0_26], %54 {strides = array<i32>} : memref<1x1x8x2x128xf32, #tpu.memory_space<vmem>>, vector<1x1x1x2x128xf32>,
    %55 = arith.mulf %23, %35 : vector<2x128xf32>
    %c1_i32 = arith.constant 1 : i32
    %56 = vector.broadcast %c1_i32 : i32 to vector<2x128xi32>
    %57 = arith.cmpi eq, %37, %56 : vector<2x128xi32>
    %cst_27 = arith.constant 0.000000e+00 : f32
    %58 = vector.broadcast %cst_27 : f32 to vector<2x128xf32>
    %59 = arith.select %57, %55, %58 : vector<2x128xi1>, vector<2x128xf32>
    %c0_28 = arith.constant 0 : index
    %c0_29 = arith.constant 0 : index
    %c1 = arith.constant 1 : index
    %c0_30 = arith.constant 0 : index
    %c0_31 = arith.constant 0 : index
    %60 = vector.load %arg5[%c0_28, %c0_29, %c1, %c0_30, %c0_31] : memref<1x1x8x2x128xf32, #tpu.memory_space<vmem>>, vector<1x1x1x2x128xf32>
    %61 = vector.shape_cast %60 : vector<1x1x1x2x128xf32> to vector<2x128xf32>
    %62 = arith.addf %61, %59 : vector<2x128xf32>
    %c0_32 = arith.constant 0 : index
    %c0_33 = arith.constant 0 : index
    %c1_34 = arith.constant 1 : index
    %c0_35 = arith.constant 0 : index
    %c0_36 = arith.constant 0 : index
    %63 = vector.load %arg5[%c0_32, %c0_33, %c1_34, %c0_35, %c0_36] : memref<1x1x8x2x128xf32, #tpu.memory_space<vmem>>, vector<1x1x1x2x128xf32>
    %64 = vector.shape_cast %63 : vector<1x1x1x2x128xf32> to vector<2x128xf32>
    %65 = vector.shape_cast %62 : vector<2x128xf32> to vector<1x1x1x2x128xf32>
    tpu.vector_store %arg5[%c0_32, %c0_33, %c1_34, %c0_35, %c0_36], %65 {strides = array<i32>} : memref<1x1x8x2x128xf32, #tpu.memory_space<vmem>>, vector<1x1x1x2x128xf32>,
    %c0_37 = arith.constant 0 : index
    %c0_38 = arith.constant 0 : index
    %c5 = arith.constant 5 : index
    %c0_39 = arith.constant 0 : index
    %c0_40 = arith.constant 0 : index
    %66 = vector.load %arg5[%c0_37, %c0_38, %c5, %c0_39, %c0_40] : memref<1x1x8x2x128xf32, #tpu.memory_space<vmem>>, vector<1x1x1x2x128xf32>
    %67 = vector.shape_cast %66 : vector<1x1x1x2x128xf32> to vector<2x128xf32>
    %68 = arith.addf %67, %55 : vector<2x128xf32>
    %c0_41 = arith.constant 0 : index
    %c0_42 = arith.constant 0 : index
    %c5_43 = arith.constant 5 : index
    %c0_44 = arith.constant 0 : index
    %c0_45 = arith.constant 0 : index
    %69 = vector.load %arg5[%c0_41, %c0_42, %c5_43, %c0_44, %c0_45] : memref<1x1x8x2x128xf32, #tpu.memory_space<vmem>>, vector<1x1x1x2x128xf32>
    %70 = vector.shape_cast %69 : vector<1x1x1x2x128xf32> to vector<2x128xf32>
    %71 = vector.shape_cast %68 : vector<2x128xf32> to vector<1x1x1x2x128xf32>
    tpu.vector_store %arg5[%c0_41, %c0_42, %c5_43, %c0_44, %c0_45], %71 {strides = array<i32>} : memref<1x1x8x2x128xf32, #tpu.memory_space<vmem>>, vector<1x1x1x2x128xf32>,
    %72 = arith.mulf %27, %35 : vector<2x128xf32>
    %c2_i32 = arith.constant 2 : i32
    %73 = vector.broadcast %c2_i32 : i32 to vector<2x128xi32>
    %74 = arith.cmpi eq, %37, %73 : vector<2x128xi32>
    %cst_46 = arith.constant 0.000000e+00 : f32
    %75 = vector.broadcast %cst_46 : f32 to vector<2x128xf32>
    %76 = arith.select %74, %72, %75 : vector<2x128xi1>, vector<2x128xf32>
    %c0_47 = arith.constant 0 : index
    %c0_48 = arith.constant 0 : index
    %c2 = arith.constant 2 : index
    %c0_49 = arith.constant 0 : index
    %c0_50 = arith.constant 0 : index
    %77 = vector.load %arg5[%c0_47, %c0_48, %c2, %c0_49, %c0_50] : memref<1x1x8x2x128xf32, #tpu.memory_space<vmem>>, vector<1x1x1x2x128xf32>
    %78 = vector.shape_cast %77 : vector<1x1x1x2x128xf32> to vector<2x128xf32>
    %79 = arith.addf %78, %76 : vector<2x128xf32>
    %c0_51 = arith.constant 0 : index
    %c0_52 = arith.constant 0 : index
    %c2_53 = arith.constant 2 : index
    %c0_54 = arith.constant 0 : index
    %c0_55 = arith.constant 0 : index
    %80 = vector.load %arg5[%c0_51, %c0_52, %c2_53, %c0_54, %c0_55] : memref<1x1x8x2x128xf32, #tpu.memory_space<vmem>>, vector<1x1x1x2x128xf32>
    %81 = vector.shape_cast %80 : vector<1x1x1x2x128xf32> to vector<2x128xf32>
    %82 = vector.shape_cast %79 : vector<2x128xf32> to vector<1x1x1x2x128xf32>
    tpu.vector_store %arg5[%c0_51, %c0_52, %c2_53, %c0_54, %c0_55], %82 {strides = array<i32>} : memref<1x1x8x2x128xf32, #tpu.memory_space<vmem>>, vector<1x1x1x2x128xf32>,
    %c0_56 = arith.constant 0 : index
    %c0_57 = arith.constant 0 : index
    %c6 = arith.constant 6 : index
    %c0_58 = arith.constant 0 : index
    %c0_59 = arith.constant 0 : index
    %83 = vector.load %arg5[%c0_56, %c0_57, %c6, %c0_58, %c0_59] : memref<1x1x8x2x128xf32, #tpu.memory_space<vmem>>, vector<1x1x1x2x128xf32>
    %84 = vector.shape_cast %83 : vector<1x1x1x2x128xf32> to vector<2x128xf32>
    %85 = arith.addf %84, %72 : vector<2x128xf32>
    %c0_60 = arith.constant 0 : index
    %c0_61 = arith.constant 0 : index
    %c6_62 = arith.constant 6 : index
    %c0_63 = arith.constant 0 : index
    %c0_64 = arith.constant 0 : index
    %86 = vector.load %arg5[%c0_60, %c0_61, %c6_62, %c0_63, %c0_64] : memref<1x1x8x2x128xf32, #tpu.memory_space<vmem>>, vector<1x1x1x2x128xf32>
    %87 = vector.shape_cast %86 : vector<1x1x1x2x128xf32> to vector<2x128xf32>
    %88 = vector.shape_cast %85 : vector<2x128xf32> to vector<1x1x1x2x128xf32>
    tpu.vector_store %arg5[%c0_60, %c0_61, %c6_62, %c0_63, %c0_64], %88 {strides = array<i32>} : memref<1x1x8x2x128xf32, #tpu.memory_space<vmem>>, vector<1x1x1x2x128xf32>,
    %89 = arith.mulf %31, %35 : vector<2x128xf32>
    %c3_i32 = arith.constant 3 : i32
    %90 = vector.broadcast %c3_i32 : i32 to vector<2x128xi32>
    %91 = arith.cmpi eq, %37, %90 : vector<2x128xi32>
    %cst_65 = arith.constant 0.000000e+00 : f32
    %92 = vector.broadcast %cst_65 : f32 to vector<2x128xf32>
    %93 = arith.select %91, %89, %92 : vector<2x128xi1>, vector<2x128xf32>
    %c0_66 = arith.constant 0 : index
    %c0_67 = arith.constant 0 : index
    %c3 = arith.constant 3 : index
    %c0_68 = arith.constant 0 : index
    %c0_69 = arith.constant 0 : index
    %94 = vector.load %arg5[%c0_66, %c0_67, %c3, %c0_68, %c0_69] : memref<1x1x8x2x128xf32, #tpu.memory_space<vmem>>, vector<1x1x1x2x128xf32>
    %95 = vector.shape_cast %94 : vector<1x1x1x2x128xf32> to vector<2x128xf32>
    %96 = arith.addf %95, %93 : vector<2x128xf32>
    %c0_70 = arith.constant 0 : index
    %c0_71 = arith.constant 0 : index
    %c3_72 = arith.constant 3 : index
    %c0_73 = arith.constant 0 : index
    %c0_74 = arith.constant 0 : index
    %97 = vector.load %arg5[%c0_70, %c0_71, %c3_72, %c0_73, %c0_74] : memref<1x1x8x2x128xf32, #tpu.memory_space<vmem>>, vector<1x1x1x2x128xf32>
    %98 = vector.shape_cast %97 : vector<1x1x1x2x128xf32> to vector<2x128xf32>
    %99 = vector.shape_cast %96 : vector<2x128xf32> to vector<1x1x1x2x128xf32>
    tpu.vector_store %arg5[%c0_70, %c0_71, %c3_72, %c0_73, %c0_74], %99 {strides = array<i32>} : memref<1x1x8x2x128xf32, #tpu.memory_space<vmem>>, vector<1x1x1x2x128xf32>,
    %c0_75 = arith.constant 0 : index
    %c0_76 = arith.constant 0 : index
    %c7 = arith.constant 7 : index
    %c0_77 = arith.constant 0 : index
    %c0_78 = arith.constant 0 : index
    %100 = vector.load %arg5[%c0_75, %c0_76, %c7, %c0_77, %c0_78] : memref<1x1x8x2x128xf32, #tpu.memory_space<vmem>>, vector<1x1x1x2x128xf32>
    %101 = vector.shape_cast %100 : vector<1x1x1x2x128xf32> to vector<2x128xf32>
    %102 = arith.addf %101, %89 : vector<2x128xf32>
    %c0_79 = arith.constant 0 : index
    %c0_80 = arith.constant 0 : index
    %c7_81 = arith.constant 7 : index
    %c0_82 = arith.constant 0 : index
    %c0_83 = arith.constant 0 : index
    %103 = vector.load %arg5[%c0_79, %c0_80, %c7_81, %c0_82, %c0_83] : memref<1x1x8x2x128xf32, #tpu.memory_space<vmem>>, vector<1x1x1x2x128xf32>
    %104 = vector.shape_cast %103 : vector<1x1x1x2x128xf32> to vector<2x128xf32>
    %105 = vector.shape_cast %102 : vector<2x128xf32> to vector<1x1x1x2x128xf32>
    tpu.vector_store %arg5[%c0_79, %c0_80, %c7_81, %c0_82, %c0_83], %105 {strides = array<i32>} : memref<1x1x8x2x128xf32, #tpu.memory_space<vmem>>, vector<1x1x1x2x128xf32>,
    return
  }
  func.func @transform_0(%arg0: i32, %arg1: i32, %arg2: i32) -> (i32, i32, i32) {
    %c1_i32 = arith.constant 1 : i32
    %0 = arith.muli %arg1, %c1_i32 : i32
    %1 = arith.addi %0, %arg2 : i32
    %c0_i32 = arith.constant 0 : i32
    %c0_i32_0 = arith.constant 0 : i32
    return %arg0, %1, %c0_i32 : i32, i32, i32
  }
  func.func @transform_1(%arg0: i32, %arg1: i32, %arg2: i32) -> (i32, i32, i32, i32) {
    %c1_i32 = arith.constant 1 : i32
    %0 = arith.muli %arg1, %c1_i32 : i32
    %1 = arith.addi %0, %arg2 : i32
    %c0_i32 = arith.constant 0 : i32
    %c0_i32_0 = arith.constant 0 : i32
    %c0_i32_1 = arith.constant 0 : i32
    return %arg0, %c0_i32, %1, %c0_i32_0 : i32, i32, i32, i32
  }
  func.func @transform_2(%arg0: i32, %arg1: i32, %arg2: i32) -> (i32, i32, i32, i32, i32) {
    %c0_i32 = arith.constant 0 : i32
    %c0_i32_0 = arith.constant 0 : i32
    %c0_i32_1 = arith.constant 0 : i32
    %c0_i32_2 = arith.constant 0 : i32
    return %arg0, %arg1, %c0_i32, %c0_i32_0, %c0_i32_1 : i32, i32, i32, i32, i32
  }
}

</mosaic_0001>

<bundles_post_ra>
// kernel: tpu_custom_call.1
= control target key start
LH: loop header
LB: loop body
LE: loop exit
PB: predicated region body
PF: predicated region fallthrough
CT: control target
= control target key end

     0   :  { %7 = vsyncpa [#allocation3], 0  ;;  %s923_s0 = inlined_call_operand.hbm [shape: s32[2,2,128], index: 0, kind: input, shape index: {}]   ;;  %s924_s1 = inlined_call_operand.hbm [shape: f32[2,4,2,128], index: 1, kind: input, shape index: {}]   ;;  %s925_s2 = inlined_call_operand.hbm [shape: f32[2,1,8,2,128], index: 2, kind: output, shape index: {}]  }
   0x1   :  { %9 = vsyncpa [#allocation3 + $0x1], 0 }
   0x2   :  { %10 = vsyncpa [#allocation6], 0 }
   0x3   :  { %12 = vsyncpa [#allocation6 + $0x1], 0 }
   0x4   :  { %13 = vsyncpa [#allocation4], 0 }
   0x5   :  { %15 = vsyncpa [#allocation4 + $0x1], 0  ;;  %s747_s9 = smov 0   ;;  %s749_s10 = smov 0  }
   0x6   :  { %s751_s11 = smov 0   ;;  %s753_s12 = smov 0  }
   0x7   :  { %s755_s13 = smov 0   ;;  %s757_s14 = smov 0  }
   0x8 LB: > { %s463_s15 = sadd.s32 4294967295, %s725_s14   ;;  %s464_s16 = sadd.s32 4294967294, %s725_s14   ;;  %s725_s14 = sphi %s757_s14, %s21_s14   ;;  %s721_s13 = sphi %s755_s13, %s935_s13   ;;  %s717_s12 = sphi %s753_s12, %s934_s12   ;;  %s713_s11 = sphi %s751_s11, %s933_s11   ;;  %s709_s10 = sphi %s749_s10, %s932_s10   ;;  %s705_s9 = sphi %s747_s9, %s931_s9  }
   0x9   : > { %s40_s17 = sadd.s32 1, %s721_s13  ;;  %s51_s18 = sadd.s32 1, %s713_s11 }
   0xa   : > { %p42_p0 = scmp.ge.s32.totalorder %s40_s17, 2  ;;  %p58_p1 = scmp.ne.s32.totalorder %s713_s11, %s709_s10 }
   0xb   : > { %p59_p2 = scmp.eq.s32.totalorder %s725_s14, 0  ;;  %p64_p3 = scmp.ne.s32.totalorder %s709_s10, %s705_s9 }
   0xc   : > { %s937_s17 = smov (%p42_p0, %s40_s17), 0  ;;  %p65_p5 = scmp.eq.s32.totalorder %s463_s15, 0 }
   0xd   : > { %p788_p4 = por %p59_p2, %p58_p1  ;;  %s46_s20 = ssub.s32 %s721_s13, %s937_s17 }
   0xe   : > { %p120_p6 = scmp.eq.s32.totalorder %s463_s15, 1  ;;  %p49_p7 = scmp.eq.s32.totalorder %s46_s20, 0 }
   0xf   : > { %p794_p8 = por %p65_p5, %p64_p3  ;;  %p126_p10 = scmp.eq.s32.totalorder %s464_s16, 1 }
  0x10   : > { %p798_p9 = por %p120_p6, %p58_p1  ;;  %p466_p12 = scmp.ge.s32.totalorder %s725_s14, 2 }
  0x11   : > { %s803_s23 = scalar_select %p49_p7, %s713_s11, %s51_s18  }
  0x12   : > { %p805_p11 = por %p126_p10, %p64_p3  ;;  %p514_p13 = scmp.lt.s32.totalorder %s725_s14, 2 }
  0x13   : > { %s812_s25 = sand.u32 1, %s713_s11   ;;  %s468_s27 = sshll.u32 %s721_s13, 1 }
  0x14   : > { %s467_s26 = sshll.u32 %s812_s25, 1  ;;  %s156_s30 = scalar_lea.hbm %s923_s0, %s468_s27 }
  0x15   : > { %s150_s3 = scalar_lea.vmem [#allocation2], %s467_s26  ;;  %s158_s5 = sshll.u32 %s156_s30, 4  ;;  %s159_s5 = int_to_ptr.hbm [resolvable:$true] %s158_s5 }
  0x16   : > { %s160_s4 = sshll.u32 %s150_s3, 4  ;;  %p821_p0 = pnand %p514_p13, %p788_p4  ;;  %s161_s4 = int_to_ptr.vmem [resolvable:$true] %s160_s4 }
  0x17   : > { %p472_p1 = scmp.ge.s32.totalorder %s725_s14, 1  ;;  %p189_p2 = scmp.lt.s32.totalorder %s725_s14, 3 }
  0x18   : > { %s147_s7 = scalar_lea.sflag [#allocation3], %s812_s25  ;;  %s469_s8 = sshll.u32 %s812_s25, 3 }
  0x19   : > { %506 = dma.hbm_to_vmem [thread:$0]  (!%p821_p0), %s159_s5, 32, %s161_s4, %s147_s7  }
  0x1a   : > { %p190_p3 = pnand %p472_p1, %p189_p2  ;;  %s495_s15 = sshll.u32 %s721_s13, 3 }
  0x1b   : > { %s178_s20 = scalar_lea.hbm %s924_s1, %s495_s15  ;;  %s171_s26 = scalar_lea.vmem [#allocation5], %s469_s8 }
  0x1c   : > { %s181_s19 = sshll.u32 %s171_s26, 4  ;;  %s179_s27 = sshll.u32 %s178_s20, 4  ;;  %s182_s19 = int_to_ptr.vmem [resolvable:$true] %s181_s19  ;;  %s180_s27 = int_to_ptr.hbm [resolvable:$true] %s179_s27 }
  0x1d   : > { %s168_s28 = scalar_lea.sflag [#allocation6], %s812_s25  ;;  %s727_s29 = smov 32  }
  0x1e   : > { %s728_s30 = smov 2   ;;  %193 = sbr.rel (%p190_p3) target bundleno = 97 (0x61), region = 28 }
  0x1f   : > { %509 = dma.hbm_to_vmem [thread:$0]  (!%p821_p0), %s180_s27, 128, %s182_s19, %s168_s28, %s727_s29, %s727_s29, %s728_s30  }
  0x20   : > { %s839_s3 = sand.u32 (!%p190_p3), 1, %s709_s10  }
  0x21   : > { %s473_s4 = sshll.u32 (!%p190_p3), %s839_s3, 1  ;;  %s196_s5 = scalar_lea.sflag (!%p190_p3), [#allocation3], %s839_s3 }
  0x22   : > { %s843_s7 = scalar_lea.vmem (!%p190_p3), [#allocation2], %s473_s4 }
  0x23   : > { %692 = dma.done.wait (%p794_p8), %s196_s5, 32  }
  0x24   : > { %694 = vsyncadd (%p794_p8), %s196_s5, 4294967264  ;;  %s474_s25 = sshll.u32 %s839_s3, 3  ;;  %s206_s6 = scalar_lea.sflag [#allocation6], %s839_s3 }
  0x25   : > { %s209_s8 = scalar_lea.vmem [#allocation5], %s474_s25 }
  0x26   : > { %696 = dma.done.wait (%p794_p8), %s206_s6, 128  }
  0x27   : > { %698 = vsyncadd (%p794_p8), %s206_s6, 4294967168  ;;  %s475_s15 = sshll.u32 %s839_s3, 4  ;;  %v729_v0 = vmov 0.0   ;;  %v250_v1 = vld [vmem:[%s209_s8] sm:$0x3]  ;;  %s496_s21 = sshll.u32 %s717_s12, 4 }
  0x28   : > { %s856_s16 = scalar_lea.vmem [#allocation7], %s475_s15  ;;  %v251_v2 = vld [vmem:[%s209_s8 + $0x2] sm:$0x3]  ;;  %v252_v3 = vld [vmem:[%s209_s8 + $0x4] sm:$0x3]  ;;  %s344_s20 = scalar_lea.hbm %s925_s2, %s496_s21 }
  0x29   : > { %242 = vst [vmem:[%s856_s16] sm:$0x3] %v729_v0  ;;  %v254_v4 = vmax.f32 %v250_v1, %v251_v2  ;;  %v253_v5 = vld [vmem:[%s209_s8 + $0x6] sm:$0x3]  ;;  %v286_v31 = vld [vmem:[%s843_s7] sm:$0x3]  ;;  %s345_s26 = sshll.u32 %s856_s16, 4  ;;  %s346_s26 = int_to_ptr.vmem [resolvable:$true] %s345_s26 }
  0x2a   : > { %243 = vst [vmem:[%s856_s16 + $0x2] sm:$0x3] %v729_v0  ;;  %vm288_vm4 = vcmp.eq.s32.totalorder %v286_v31, 0  ;;  %vm298_vm5 = vcmp.eq.s32.totalorder %v286_v31, 1  ;;  %vm309_vm6 = vcmp.eq.s32.totalorder %v286_v31, 2  ;;  %vm320_vm7 = vcmp.eq.s32.totalorder %v286_v31, 3 }
  0x2b   : > { %244 = vst [vmem:[%s856_s16 + $0x4] sm:$0x3] %v729_v0  ;;  %v255_v6 = vmax.f32 %v254_v4, %v252_v3  ;;  %s347_s19 = sshll.u32 %s344_s20, 4  ;;  %s331_s27 = scalar_lea.sflag [#allocation4], %s839_s3  ;;  %s348_s19 = int_to_ptr.hbm [resolvable:$true] %s347_s19 }
  0x2c   : > { %245 = vst [vmem:[%s856_s16 + $0x6] sm:$0x3] %v729_v0  ;;  %s653_s28 = sshra.s32 %s348_s19, 4  ;;  %s659_s5 = scalar_lea.hbm %s925_s2, 32  ;;  %s654_s28 = int_to_ptr.hbm [resolvable:$true] %s653_s28 }
  0x2d   : > { %246 = vst [vmem:[%s856_s16 + $0x8] sm:$0x3] %v729_v0  ;;  %v256_v7 = vmax.f32 %v255_v6, %v253_v5  ;;  %s655_s29 = scalar_lea.hbm %s654_s28, 16  ;;  %p660_p7 = scmp.lt.s32.totalorder %s654_s28, %s925_s2 }
  0x2e   : > { %247 = vst [vmem:[%s856_s16 + $0xa] sm:$0x3] %v729_v0  ;;  %p656_p4 = scmp.ne.s32.totalorder %s654_s28, %s655_s29  ;;  %p661_p8 = scmp.lt.s32.totalorder %s659_s5, %s655_s29 }
  0x2f   : > { %248 = vst [vmem:[%s856_s16 + $0xc] sm:$0x3] %v729_v0  ;;  %v257_v8 = vsub.f32 %v250_v1, %v256_v7  ;;  %v260_v9 = vsub.f32 %v251_v2, %v256_v7  ;;  %v263_v10 = vsub.f32 %v252_v3, %v256_v7  ;;  %v266_v11 = vsub.f32 %v253_v5, %v256_v7 }
  0x30   : > { %249 = vst [vmem:[%s856_s16 + $0xe] sm:$0x3] %v729_v0  ;;  %v290_v36 = vld [vmem:[%s856_s16] sm:$0x3]  ;;  %p657_p5 = pnand %p656_p4, %p798_p9  ;;  %p662_p10 = por %p661_p8, %p660_p7 }
  0x31   : > { %v258_v12 = vmul.f32 1.442695, %v257_v8  ;;  %v261_v13 = vmul.f32 1.442695, %v260_v9  ;;  %v264_v14 = vmul.f32 1.442695, %v263_v10 }
  0x32   : > { %v267_v15 = vmul.f32 1.442695, %v266_v11  ;;  %v478_v38 = vld [vmem:[%s856_s16 + $0x2] sm:$0x3]  ;;  %v482_v42 = vld [vmem:[%s856_s16 + $0x4] sm:$0x3]  ;;  %p658_p6 = pneg %p657_p5 }
  0x33   : > { %569 = vpow2.f32 %v258_v12  ;;  %v486_v51 = vld [vmem:[%s856_s16 + $0x6] sm:$0x3] }
  0x34   : > { %571 = vpow2.f32 %v261_v13  ;;  %v476_v34 = vld [vmem:[%s856_s16 + $0x8] sm:$0x3]  ;;  %p663_p13 = pnand %p662_p10, %p658_p6 }
  0x35   : > { %573 = vpow2.f32 %v264_v14  ;;  %v480_v39 = vld [vmem:[%s856_s16 + $0xa] sm:$0x3] }
  0x36   : > { %575 = vpow2.f32 %v267_v15  ;;  %v484_v46 = vld [vmem:[%s856_s16 + $0xc] sm:$0x3] }
  0x37   : > { %v488_v54 = vld [vmem:[%s856_s16 + $0xe] sm:$0x3] }
  0x39   : > { %v570_v16 = vpop.eup %569 }
  0x3a   : > { %v572_v17 = vpop.eup %571 }
  0x3b   : > { %v574_v18 = vpop.eup %573  ;;  %v269_v19 = vadd.f32 %v572_v17, %v570_v16 }
  0x3c   : > { %v576_v20 = vpop.eup %575 }
  0x3d   : > { %v270_v21 = vadd.f32 %v574_v18, %v269_v19 }
  0x3f   : > { %v271_v22 = vadd.f32 %v576_v20, %v270_v21 }
  0x41   : > { %577 = vrcp.f32 %v271_v22  ;;  %v283_v25 = vand.u32 2147483648, %v271_v22  ;;  %vm277_vm0 = vweird.f32 %v271_v22  ;;  %v281_v27 = vand.u32 2147483647, %v271_v22 }
  0x43   : > { %v284_v29 = vor.u32 1.1754944e-38, %v283_v25  ;;  %vm282_vm3 = vcmp.eq.f32.partialorder %v281_v27, 8.507059e+37 }
  0x47   : > { %v578_v23 = vpop.eup %577 }
  0x48   : > { %v273_v24 = vmul.f32 %v578_v23, %v271_v22  ;;  %vm278_vm1 = vweird.f32 %v578_v23 }
  0x49   : > { %vm279_vm2 = vmor %vm277_vm0, %vm278_vm1 }
  0x4a   : > { %v274_v26 = vsub.f32 1.0, %v273_v24 }
  0x4c   : > { %v275_v28 = vmul.f32 %v578_v23, %v274_v26 }
  0x4e   : > { %v276_v30 = vadd.f32 %v578_v23, %v275_v28 }
  0x50   : > { %v280_v32 = vsel %vm279_vm2, %v578_v23, %v276_v30 }
  0x51   : > { %v285_v33 = vsel %vm282_vm3, %v284_v29, %v280_v32 }
  0x52   : > { %v287_v35 = vmul.f32 %v570_v16, %v285_v33  ;;  %v297_v37 = vmul.f32 %v572_v17, %v285_v33  ;;  %v308_v40 = vmul.f32 %v574_v18, %v285_v33  ;;  %v319_v41 = vmul.f32 %v576_v20, %v285_v33 }
  0x54   : > { %v289_v43 = vsel %vm288_vm4, %v287_v35, 0.0  ;;  %v295_v44 = vadd.f32 %v476_v34, %v287_v35  ;;  %v299_v45 = vsel %vm298_vm5, %v297_v37, 0.0  ;;  %v306_v49 = vadd.f32 %v480_v39, %v297_v37 }
  0x55   : > { %v291_v47 = vadd.f32 %v290_v36, %v289_v43  ;;  %v302_v48 = vadd.f32 %v478_v38, %v299_v45  ;;  %v310_v50 = vsel %vm309_vm6, %v308_v40, 0.0  ;;  %v321_v53 = vsel %vm320_vm7, %v319_v41, 0.0 }
  0x56   : > { %477 = vst [vmem:[%s856_s16 + $0x8] sm:$0x3] %v295_v44  ;;  %v313_v52 = vadd.f32 %v482_v42, %v310_v50  ;;  %v317_v55 = vadd.f32 %v484_v46, %v308_v40  ;;  %v324_v56 = vadd.f32 %v486_v51, %v321_v53  ;;  %v328_v57 = vadd.f32 %v488_v54, %v319_v41 }
  0x57   : > { %292 = vst [vmem:[%s856_s16] sm:$0x3] %v291_v47 }
  0x58   : > { %479 = vst [vmem:[%s856_s16 + $0x2] sm:$0x3] %v302_v48 }
  0x59   : > { %481 = vst [vmem:[%s856_s16 + $0xa] sm:$0x3] %v306_v49 }
  0x5a   : > { %483 = vst [vmem:[%s856_s16 + $0x4] sm:$0x3] %v313_v52 }
  0x5b   : > { %485 = vst [vmem:[%s856_s16 + $0xc] sm:$0x3] %v317_v55 }
  0x5c   : > { %487 = vst [vmem:[%s856_s16 + $0x6] sm:$0x3] %v324_v56 }
  0x5d   : > { %489 = vst [vmem:[%s856_s16 + $0xe] sm:$0x3] %v328_v57 }
  0x5e   : > { %666 = shalt.err (!%p663_p13)
}
  0x5f   : > { %s730_s3 = smov 32   ;;  %s731_s6 = smov 2  }
  0x60   : > { %501 = dma.vmem_to_hbm [thread:$0]  (%p798_p9), %s346_s26, 256, %s348_s19, %s331_s27, %s730_s3, %s730_s3, %s731_s6  }
  0x61 PF: > { %s362_s8 = sand.u32 1, %s705_s9   ;;  %p511_p0 = pnand %p466_p12, %p805_p11 }
  0x62   : > { %s363_s15 = scalar_lea.sflag [#allocation4], %s362_s8 }
  0x63   : > { %p512_p1 = pneg %p511_p0 }
  0x65   : > { %700 = dma.done.wait (%p512_p1), %s363_s15, 256  }
  0x66   : > { %702 = vsyncadd (%p512_p1), %s363_s15, 4294967040  ;;  %s21_s14 = sadd.s32 1, %s725_s14   ;;  %s931_s9 = smov %s709_s10 }
  0x67   : > { %p18_p2 = scmp.ge.s32.totalorder %s21_s14, 4   ;;  %s932_s10 = smov %s713_s11 }
  0x68   : > { %s933_s11 = smov %s803_s23  ;;  %s934_s12 = smov %s721_s13 }
  0x69   : > { %s935_s13 = smov %s937_s17  ;;  %20 = sbr.rel (!%p18_p2) target bundleno = 8 (0x8), region = 97 }
  0x6e   :  { %369 = vsyncpa [#allocation3], 1 }
  0x6f   :  { %371 = vsyncpa [#allocation3 + $0x1], 1 }
  0x70   :  { %372 = vsyncpa [#allocation6], 1 }
  0x71   :  { %374 = vsyncpa [#allocation6 + $0x1], 1 }
  0x72   :  { %375 = vsyncpa [#allocation4], 1 }
  0x73   :  { %377 = vsyncpa [#allocation4 + $0x1], 1 }

</bundles_post_ra>
